<compile_context>
chip_gen: v5e
topology: v5e:2x2
jax: 0.10.0
libtpu: 0.0.40
codegen_flags: <defaults>
</compile_context>

<pallas_src>
import math
import jax
import jax.numpy as jnp
from jax.experimental import pallas as pl
from jax.experimental.pallas import tpu as pltpu

# Toy, self-consistent shapes: batch, seq, hidden, heads, ffn, vocab, classes.
B, S, D, H, F, V, C = 2, 8, 32, 2, 64, 24, 4
DH = D // H
CP = 128                       # classifier output padded to a lane-dense width
MXU_DTYPE = jnp.bfloat16       # MXU operand dtype (bf16 on v5e/v6e/v7x);
                               # VPU/EUP math stays f32 on all generations.


def _tpu_defaults():
    """Per-generation launch defaults.

    v7x: 2 TensorCores/chip -> split the batch across both cores; 64 MiB
    physical VMEM -> cap scoped VMEM at 48 MiB.  v5e/v6e: 1 TC, 128 MiB
    physical -> single program, 100 MiB scoped-VMEM ceiling (the 16/32 MiB
    default is far too small once real ESM weights are resident).
    """
    kind = ""
    try:
        kind = jax.devices()[0].device_kind.lower()
    except Exception:
        pass
    is_v7x = ("v7" in kind) or ("tpu7" in kind)
    num_programs = 2 if (is_v7x and B % 2 == 0) else 1
    vmem_limit = (48 if is_v7x else 100) * 1024 * 1024
    return num_programs, vmem_limit


NUM_PROGRAMS, VMEM_LIMIT_BYTES = _tpu_defaults()
BB = B // NUM_PROGRAMS         # batch rows handled per program / TensorCore

FUSED_WKEYS = ["wqkv", "bqkv", "wo", "vecs", "w1", "b1", "w2", "wc", "bc"]


def esm_kernel(x_ref, mask_ref,
               wqkv_ref, bqkv_ref, wo_ref, vecs_ref,
               w1_ref, b1_ref, w2_ref, wc_ref, bc_ref,
               out_ref):
    x = x_ref[...]                        # (BB, S, D) f32
    mask3 = mask_ref[...]                 # (BB, S, 1) f32 {0,1}
    x2 = x.reshape(BB * S, D)

    vecs = vecs_ref[...]                  # (6, D): bo, g1, be1, b2, g2, be2
    bo, g1, be1 = vecs[0:1], vecs[1:2], vecs[2:3]
    b2, g2, be2 = vecs[3:4], vecs[4:5], vecs[5:6]

    def layernorm(v, g, b):
        mu = jnp.mean(v, axis=-1, keepdims=True)
        var = jnp.mean((v - mu) ** 2, axis=-1, keepdims=True)
        return (v - mu) * jax.lax.rsqrt(var + 1e-5) * g + b

    # ---- fused QKV projection: one wide bf16 MXU matmul, f32 accumulation;
    #      1/sqrt(DH) is folded into the q slice of wqkv on the host. ----
    qkv = jnp.dot(x2.astype(MXU_DTYPE), wqkv_ref[...],
                  preferred_element_type=jnp.float32) + bqkv_ref[...]
    q = qkv[:, :D].reshape(BB, S, D)
    k = qkv[:, D:2 * D].reshape(BB, S, D)
    v = qkv[:, 2 * D:].reshape(BB, S, D)

    # Additive key-padding mask, applied in f32 *after* the f32-accumulated dot.
    neg = ((1.0 - mask3[:, :, 0]) * (-1e9))[:, None, :]     # (BB, 1, S)

    # ---- multi-head attention.  Output projection wo is folded into the head
    #      loop: each head's context goes straight through its (DH, D) row
    #      slice of wo (8-sublane aligned) and accumulates into `attn`, so
    #      there is no H-way lane concatenate and no H live context tiles. ----
    # TODO(synk): at real ESM sizes (S>=256) switch to flash-style key-block
    # tiling (online softmax with m/l/acc scratch) instead of full (BB, S, S)
    # score tiles.
    attn = jnp.zeros((BB * S, D), jnp.float32)
    for h in range(H):
        sl = slice(h * DH, (h + 1) * DH)
        qh = q[:, :, sl].astype(MXU_DTYPE)
        kh = k[:, :, sl].astype(MXU_DTYPE)
        vh = v[:, :, sl].astype(MXU_DTYPE)
        s = jnp.einsum('bqd,bkd->bqk', qh, kh,
                       preferred_element_type=jnp.float32) + neg
        s = s - jnp.max(s, axis=-1, keepdims=True)
        p = jnp.exp(s)                                       # f32 softmax
        p = p * pl.reciprocal(jnp.sum(p, axis=-1, keepdims=True), approx=True)
        ctx_h = jnp.einsum('bqk,bkd->bqd', p.astype(MXU_DTYPE), vh,
                           preferred_element_type=jnp.float32)
        attn = attn + jnp.dot(ctx_h.reshape(BB * S, DH).astype(MXU_DTYPE),
                              wo_ref[sl, :],
                              preferred_element_type=jnp.float32)
    attn = attn + bo

    h1 = layernorm(x2 + attn, g1, be1)

    # ---- feed-forward (bf16 MXU operands, f32 accumulation & gelu) ----
    # TODO(synk): at real ESM sizes (D=1280, F=5120) tile w1/w2 over F with an
    # 'arbitrary' grid axis and an f32 VMEM accumulator to fit v7x's 64 MiB.
    ff = jnp.dot(h1.astype(MXU_DTYPE), w1_ref[...],
                 preferred_element_type=jnp.float32) + b1_ref[...]
    ff = jax.nn.gelu(ff, approximate=True)
    ff = jnp.dot(ff.astype(MXU_DTYPE), w2_ref[...],
                 preferred_element_type=jnp.float32) + b2
    h2 = layernorm(h1 + ff, g2, be2).reshape(BB, S, D)

    # ---- masked mean pooling (mean_pooling semantics) ----
    sum_emb = jnp.sum(h2 * mask3, axis=1)                            # (BB, D)
    ntok = jnp.maximum(jnp.sum(mask3, axis=1), 1e-9)                 # (BB, 1)
    pooled = sum_emb * pl.reciprocal(ntok, approx=True)

    # ---- classifier head -> lane-dense padded logits, one wide store ----
    logits = jnp.dot(pooled.astype(MXU_DTYPE), wc_ref[...],
                     preferred_element_type=jnp.float32) + bc_ref[...]
    out_ref[...] = logits.reshape(BB, 1, CP)


def init_params(key):
    ks = jax.random.split(key, 12)
    def init(k, shape, scale=0.02):
        return (scale * jax.random.normal(k, shape)).astype(jnp.float32)
    z = lambda shape: jnp.zeros(shape, jnp.float32)
    o = lambda shape: jnp.ones(shape, jnp.float32)
    return {
        "emb": init(ks[0], (V, D)),
        "pos": init(ks[1], (S, D)),
        "wq": init(ks[2], (D, D)), "bq": z((1, D)),
        "wk": init(ks[3], (D, D)), "bk": z((1, D)),
        "wv": init(ks[4], (D, D)), "bv": z((1, D)),
        "wo": init(ks[5], (D, D)), "bo": z((1, D)),
        "g1": o((1, D)), "be1": z((1, D)),
        "w1": init(ks[6], (D, F)), "b1": z((1, F)),
        "w2": init(ks[7], (F, D)), "b2": z((1, D)),
        "g2": o((1, D)), "be2": z((1, D)),
        "wc": init(ks[8], (D, C)), "bc": z((1, C)),
    }


def fuse_params(p):
    """Host-side (one-time) weight fusion/padding for the kernel layout.

    Matmul weights are stored in bf16 (MXU operand dtype, half the weight DMA
    bytes); biases/gains stay f32 (VPU math).
    """
    scale = 1.0 / math.sqrt(DH)
    wqkv = jnp.concatenate([p["wq"] * scale, p["wk"], p["wv"]], axis=1)
    wc = jnp.zeros((D, CP), jnp.float32).at[:, :C].set(p["wc"])
    return {
        "wqkv": wqkv.astype(MXU_DTYPE),
        "bqkv": jnp.concatenate([p["bq"] * scale, p["bk"], p["bv"]], axis=1),
        "wo": p["wo"].astype(MXU_DTYPE),
        "vecs": jnp.concatenate([p["bo"], p["g1"], p["be1"],
                                 p["b2"], p["g2"], p["be2"]], axis=0),
        "w1": p["w1"].astype(MXU_DTYPE), "b1": p["b1"],
        "w2": p["w2"].astype(MXU_DTYPE),
        "wc": wc.astype(MXU_DTYPE),
        "bc": jnp.zeros((1, CP), jnp.float32).at[:, :C].set(p["bc"]),
        "emb": p["emb"], "pos": p["pos"],
    }


def finetune_esm_forward(input_ids, attention_mask, fused):
    # Glue: embedding gather + learned positions (outside the kernel).
    x = fused["emb"][input_ids] + fused["pos"][None, :, :]       # (B, S, D)
    mask = attention_mask.astype(jnp.float32)[:, :, None]        # (B, S, 1)

    def wspec(shape):
        # Grid-invariant weights: constant index map + single buffer
        # (default double-buffering would double their VMEM footprint).
        n = len(shape)
        return pl.BlockSpec(shape, lambda g, _n=n: (0,) * _n,
                            pipeline_mode=pl.Buffered(1))

    weights = [fused[k] for k in FUSED_WKEYS]
    out = pl.pallas_call(
        esm_kernel,
        out_shape=jax.ShapeDtypeStruct((B, 1, CP), jnp.float32),
        grid=(NUM_PROGRAMS,),
        in_specs=[pl.BlockSpec((BB, S, D), lambda g: (g, 0, 0)),
                  pl.BlockSpec((BB, S, 1), lambda g: (g, 0, 0))]
                 + [wspec(w.shape) for w in weights],
        out_specs=pl.BlockSpec((BB, 1, CP), lambda g: (g, 0, 0)),
        compiler_params=pltpu.CompilerParams(
            dimension_semantics=("parallel",),
            vmem_limit_bytes=VMEM_LIMIT_BYTES),
    )(x, mask, *weights)
    return out[:, 0, :C]                                         # (B, C)


def reference_forward(input_ids, attention_mask, params):
    # Pure-JAX f32 reference of the same synthetic ESM forward (verification).
    x = params["emb"][input_ids] + params["pos"][None, :, :]
    m = attention_mask.astype(jnp.float32)

    def ln(v, g, b):
        mu = jnp.mean(v, -1, keepdims=True)
        var = jnp.mean((v - mu) ** 2, -1, keepdims=True)
        return (v - mu) * jax.lax.rsqrt(var + 1e-5) * g + b

    q = x @ params["wq"] + params["bq"]
    k = x @ params["wk"] + params["bk"]
    v = x @ params["wv"] + params["bv"]
    qh = q.reshape(B, S, H, DH).transpose(0, 2, 1, 3)
    kh = k.reshape(B, S, H, DH).transpose(0, 2, 1, 3)
    vh = v.reshape(B, S, H, DH).transpose(0, 2, 1, 3)
    s = jnp.einsum("bhqd,bhkd->bhqk", qh, kh) / math.sqrt(DH)
    s = s + (1.0 - m)[:, None, None, :] * (-1e9)
    p = jax.nn.softmax(s, axis=-1)
    ctx = jnp.einsum("bhqk,bhkd->bhqd", p, vh).transpose(0, 2, 1, 3).reshape(B, S, D)
    h1 = ln(x + ctx @ params["wo"] + params["bo"], params["g1"], params["be1"])
    ff = jax.nn.gelu(h1 @ params["w1"] + params["b1"], approximate=True)
    ff = ff @ params["w2"] + params["b2"]
    h2 = ln(h1 + ff, params["g2"], params["be2"])
    expanded = m[:, :, None]
    pooled = (h2 * expanded).sum(1) / jnp.maximum(expanded.sum(1), 1e-9)
    return pooled @ params["wc"] + params["bc"]


if __name__ == "__main__":
    key = jax.random.PRNGKey(0)
    k_ids, k_len, k_par = jax.random.split(key, 3)

    input_ids = jax.random.randint(k_ids, (B, S), 0, V, dtype=jnp.int32)
    lens = jax.random.randint(k_len, (B,), 3, S + 1, dtype=jnp.int32)
    attention_mask = (jnp.arange(S)[None, :] < lens[:, None]).astype(jnp.int32)  # (B, S)

    params = init_params(k_par)
    fused = fuse_params(params)          # one-time host-side weight fusion

    batch = {"input_ids": input_ids, "attention_mask": attention_mask}
    logits = finetune_esm_forward(batch["input_ids"], batch["attention_mask"], fused)
    jax.block_until_ready(logits)

    ref = reference_forward(batch["input_ids"], batch["attention_mask"], params)
    assert logits.shape == (B, C)
    # Tolerance vs the f32 reference is loosened because the kernel uses bf16
    # MXU operands / bf16-stored weights and EUP approximate reciprocals for
    # softmax normalization and mean pooling.
    assert jnp.allclose(logits, ref, atol=1e-2, rtol=1e-2), (
        float(jnp.max(jnp.abs(logits - ref))))

    print("KERNEL_OK")
</pallas_src>

<mosaic_0001>
module attributes {stable_mosaic.version = 11 : i64} {
  func.func @esm_kernel(%arg0: i32, %arg1: memref<2x8x32xf32, #tpu.memory_space<vmem>>, %arg2: memref<2x8x1xf32, #tpu.memory_space<vmem>>, %arg3: memref<32x96xbf16, #tpu.memory_space<vmem>>, %arg4: memref<1x96xf32, #tpu.memory_space<vmem>>, %arg5: memref<32x32xbf16, #tpu.memory_space<vmem>>, %arg6: memref<6x32xf32, #tpu.memory_space<vmem>>, %arg7: memref<32x64xbf16, #tpu.memory_space<vmem>>, %arg8: memref<1x64xf32, #tpu.memory_space<vmem>>, %arg9: memref<64x32xbf16, #tpu.memory_space<vmem>>, %arg10: memref<32x128xbf16, #tpu.memory_space<vmem>>, %arg11: memref<1x128xf32, #tpu.memory_space<vmem>>, %arg12: memref<2x1x128xf32, #tpu.memory_space<vmem>>) attributes {dimension_semantics = [#tpu.dimension_semantics<parallel>], iteration_bounds = array<i64: 1>, scalar_prefetch = 0 : i64, scratch_operands = 0 : i64, tpu.core_type = #tpu.core_type<tc>, window_params = [{transform_indices = @transform_0, window_bounds = array<i64: 2, 8, 32>}, {transform_indices = @transform_1, window_bounds = array<i64: 2, 8, 1>}, {pipeline_mode = #tpu.pipeline_mode<synchronous>, transform_indices = @transform_2, window_bounds = array<i64: 32, 96>}, {pipeline_mode = #tpu.pipeline_mode<synchronous>, transform_indices = @transform_3, window_bounds = array<i64: 1, 96>}, {pipeline_mode = #tpu.pipeline_mode<synchronous>, transform_indices = @transform_4, window_bounds = array<i64: 32, 32>}, {pipeline_mode = #tpu.pipeline_mode<synchronous>, transform_indices = @transform_5, window_bounds = array<i64: 6, 32>}, {pipeline_mode = #tpu.pipeline_mode<synchronous>, transform_indices = @transform_6, window_bounds = array<i64: 32, 64>}, {pipeline_mode = #tpu.pipeline_mode<synchronous>, transform_indices = @transform_7, window_bounds = array<i64: 1, 64>}, {pipeline_mode = #tpu.pipeline_mode<synchronous>, transform_indices = @transform_8, window_bounds = array<i64: 64, 32>}, {pipeline_mode = #tpu.pipeline_mode<synchronous>, transform_indices = @transform_9, window_bounds = array<i64: 32, 128>}, {pipeline_mode = #tpu.pipeline_mode<synchronous>, transform_indices = @transform_10, window_bounds = array<i64: 1, 128>}, {transform_indices = @transform_11, window_bounds = array<i64: 2, 1, 128>}]} {
    %c0 = arith.constant 0 : index
    %c0_0 = arith.constant 0 : index
    %c0_1 = arith.constant 0 : index
    %0 = vector.load %arg1[%c0, %c0_0, %c0_1] : memref<2x8x32xf32, #tpu.memory_space<vmem>>, vector<2x8x32xf32>
    %c0_2 = arith.constant 0 : index
    %c0_3 = arith.constant 0 : index
    %c0_4 = arith.constant 0 : index
    %1 = vector.load %arg2[%c0_2, %c0_3, %c0_4] : memref<2x8x1xf32, #tpu.memory_space<vmem>>, vector<2x8x1xf32>
    %2 = vector.shape_cast %0 : vector<2x8x32xf32> to vector<16x32xf32>
    %c0_5 = arith.constant 0 : index
    %c0_6 = arith.constant 0 : index
    %3 = vector.load %arg6[%c0_5, %c0_6] : memref<6x32xf32, #tpu.memory_space<vmem>>, vector<6x32xf32>
    %4 = vector.extract_strided_slice %3 {offsets = [0, 0], sizes = [1, 32], strides = [1, 1]} : vector<6x32xf32> to vector<1x32xf32>
    %5 = vector.extract_strided_slice %3 {offsets = [1, 0], sizes = [1, 32], strides = [1, 1]} : vector<6x32xf32> to vector<1x32xf32>
    %6 = vector.extract_strided_slice %3 {offsets = [2, 0], sizes = [1, 32], strides = [1, 1]} : vector<6x32xf32> to vector<1x32xf32>
    %7 = vector.extract_strided_slice %3 {offsets = [3, 0], sizes = [1, 32], strides = [1, 1]} : vector<6x32xf32> to vector<1x32xf32>
    %8 = vector.extract_strided_slice %3 {offsets = [4, 0], sizes = [1, 32], strides = [1, 1]} : vector<6x32xf32> to vector<1x32xf32>
    %9 = vector.extract_strided_slice %3 {offsets = [5, 0], sizes = [1, 32], strides = [1, 1]} : vector<6x32xf32> to vector<1x32xf32>
    %10 = arith.truncf %2 : vector<16x32xf32> to vector<16x32xbf16>
    %c0_7 = arith.constant 0 : index
    %c0_8 = arith.constant 0 : index
    %11 = vector.load %arg3[%c0_7, %c0_8] : memref<32x96xbf16, #tpu.memory_space<vmem>>, vector<32x96xbf16>
    %cst = arith.constant dense<0.000000e+00> : vector<16x96xf32>
    %12 = tpu.matmul %10, %11, %cst {dimension_numbers = #tpu.dot_dimension_numbers<[1], [0], [0], [1], [0, 0, 1, 1], [], []>} : vector<16x32xbf16>, vector<32x96xbf16>, vector<16x96xf32> -> vector<16x96xf32>
    %c0_9 = arith.constant 0 : index
    %c0_10 = arith.constant 0 : index
    %13 = vector.load %arg4[%c0_9, %c0_10] : memref<1x96xf32, #tpu.memory_space<vmem>>, vector<1x96xf32>
    %14 = vector.broadcast %13 : vector<1x96xf32> to vector<16x96xf32>
    %15 = arith.addf %12, %14 : vector<16x96xf32>
    %16 = vector.extract_strided_slice %15 {offsets = [0, 0], sizes = [16, 32], strides = [1, 1]} : vector<16x96xf32> to vector<16x32xf32>
    %17 = vector.shape_cast %16 : vector<16x32xf32> to vector<2x8x32xf32>
    %18 = vector.extract_strided_slice %15 {offsets = [0, 32], sizes = [16, 32], strides = [1, 1]} : vector<16x96xf32> to vector<16x32xf32>
    %19 = vector.shape_cast %18 : vector<16x32xf32> to vector<2x8x32xf32>
    %20 = vector.extract_strided_slice %15 {offsets = [0, 64], sizes = [16, 32], strides = [1, 1]} : vector<16x96xf32> to vector<16x32xf32>
    %21 = vector.shape_cast %20 : vector<16x32xf32> to vector<2x8x32xf32>
    %22 = vector.shape_cast %1 : vector<2x8x1xf32> to vector<2x8xf32>
    %cst_11 = arith.constant 1.000000e+00 : f32
    %23 = vector.broadcast %cst_11 : f32 to vector<2x8xf32>
    %24 = arith.subf %23, %22 : vector<2x8xf32>
    %cst_12 = arith.constant -1.000000e+09 : f32
    %25 = vector.broadcast %cst_12 : f32 to vector<2x8xf32>
    %26 = arith.mulf %24, %25 : vector<2x8xf32>
    %27 = vector.shape_cast %26 : vector<2x8xf32> to vector<2x1x8xf32>
    %cst_13 = arith.constant 0.000000e+00 : f32
    %28 = vector.broadcast %cst_13 : f32 to vector<16x32xf32>
    %29 = vector.extract_strided_slice %17 {offsets = [0, 0, 0], sizes = [2, 8, 16], strides = [1, 1, 1]} : vector<2x8x32xf32> to vector<2x8x16xf32>
    %30 = arith.truncf %29 : vector<2x8x16xf32> to vector<2x8x16xbf16>
    %31 = vector.extract_strided_slice %19 {offsets = [0, 0, 0], sizes = [2, 8, 16], strides = [1, 1, 1]} : vector<2x8x32xf32> to vector<2x8x16xf32>
    %32 = arith.truncf %31 : vector<2x8x16xf32> to vector<2x8x16xbf16>
    %33 = vector.extract_strided_slice %21 {offsets = [0, 0, 0], sizes = [2, 8, 16], strides = [1, 1, 1]} : vector<2x8x32xf32> to vector<2x8x16xf32>
    %34 = arith.truncf %33 : vector<2x8x16xf32> to vector<2x8x16xbf16>
    "tpu.trace_start"() <{level = 10 : i32, message = "bqd,bkd->bqk"}> : () -> ()
    %cst_14 = arith.constant dense<0.000000e+00> : vector<2x8x8xf32>
    %35 = tpu.matmul %30, %32, %cst_14 {dimension_numbers = #tpu.dot_dimension_numbers<[2], [2], [1], [1], [0, 0, 0, 1, 1, 1], [0], [0]>} : vector<2x8x16xbf16>, vector<2x8x16xbf16>, vector<2x8x8xf32> -> vector<2x8x8xf32>
    "tpu.trace_stop"() : () -> ()
    %36 = vector.broadcast %27 : vector<2x1x8xf32> to vector<2x8x8xf32>
    %37 = arith.addf %35, %36 : vector<2x8x8xf32>
    %cst_15 = arith.constant dense<0xFF800000> : vector<2x8xf32>
    %38 = vector.multi_reduction <maximumf>, %37, %cst_15 [2] : vector<2x8x8xf32> to vector<2x8xf32>
    %39 = vector.shape_cast %38 : vector<2x8xf32> to vector<2x8x1xf32>
    %40 = vector.broadcast %39 : vector<2x8x1xf32> to vector<2x8x8xf32>
    %41 = arith.subf %37, %40 : vector<2x8x8xf32>
    %42 = math.exp %41 : vector<2x8x8xf32>
    %cst_16 = arith.constant dense<0.000000e+00> : vector<2x8xf32>
    %43 = vector.multi_reduction <add>, %42, %cst_16 [2] : vector<2x8x8xf32> to vector<2x8xf32>
    %44 = vector.shape_cast %43 : vector<2x8xf32> to vector<2x8x1xf32>
    %45 = tpu.reciprocal %44 {approx = true} : vector<2x8x1xf32> -> vector<2x8x1xf32>
    %46 = vector.broadcast %45 : vector<2x8x1xf32> to vector<2x8x8xf32>
    %47 = arith.mulf %42, %46 : vector<2x8x8xf32>
    %48 = arith.truncf %47 : vector<2x8x8xf32> to vector<2x8x8xbf16>
    "tpu.trace_start"() <{level = 10 : i32, message = "bqk,bkd->bqd"}> : () -> ()
    %cst_17 = arith.constant dense<0.000000e+00> : vector<2x8x16xf32>
    %49 = tpu.matmul %48, %34, %cst_17 {dimension_numbers = #tpu.dot_dimension_numbers<[2], [1], [1], [2], [0, 0, 0, 1, 1, 2], [0], [0]>} : vector<2x8x8xbf16>, vector<2x8x16xbf16>, vector<2x8x16xf32> -> vector<2x8x16xf32>
    "tpu.trace_stop"() : () -> ()
    %50 = vector.shape_cast %49 : vector<2x8x16xf32> to vector<16x16xf32>
    %51 = arith.truncf %50 : vector<16x16xf32> to vector<16x16xbf16>
    %c0_18 = arith.constant 0 : index
    %c0_19 = arith.constant 0 : index
    %52 = vector.load %arg5[%c0_18, %c0_19] : memref<32x32xbf16, #tpu.memory_space<vmem>>, vector<16x32xbf16>
    %cst_20 = arith.constant dense<0.000000e+00> : vector<16x32xf32>
    %53 = tpu.matmul %51, %52, %cst_20 {dimension_numbers = #tpu.dot_dimension_numbers<[1], [0], [0], [1], [0, 0, 1, 1], [], []>} : vector<16x16xbf16>, vector<16x32xbf16>, vector<16x32xf32> -> vector<16x32xf32>
    %54 = arith.addf %28, %53 : vector<16x32xf32>
    %55 = vector.extract_strided_slice %17 {offsets = [0, 0, 16], sizes = [2, 8, 16], strides = [1, 1, 1]} : vector<2x8x32xf32> to vector<2x8x16xf32>
    %56 = arith.truncf %55 : vector<2x8x16xf32> to vector<2x8x16xbf16>
    %57 = vector.extract_strided_slice %19 {offsets = [0, 0, 16], sizes = [2, 8, 16], strides = [1, 1, 1]} : vector<2x8x32xf32> to vector<2x8x16xf32>
    %58 = arith.truncf %57 : vector<2x8x16xf32> to vector<2x8x16xbf16>
    %59 = vector.extract_strided_slice %21 {offsets = [0, 0, 16], sizes = [2, 8, 16], strides = [1, 1, 1]} : vector<2x8x32xf32> to vector<2x8x16xf32>
    %60 = arith.truncf %59 : vector<2x8x16xf32> to vector<2x8x16xbf16>
    "tpu.trace_start"() <{level = 10 : i32, message = "bqd,bkd->bqk"}> : () -> ()
    %cst_21 = arith.constant dense<0.000000e+00> : vector<2x8x8xf32>
    %61 = tpu.matmul %56, %58, %cst_21 {dimension_numbers = #tpu.dot_dimension_numbers<[2], [2], [1], [1], [0, 0, 0, 1, 1, 1], [0], [0]>} : vector<2x8x16xbf16>, vector<2x8x16xbf16>, vector<2x8x8xf32> -> vector<2x8x8xf32>
    "tpu.trace_stop"() : () -> ()
    %62 = vector.broadcast %27 : vector<2x1x8xf32> to vector<2x8x8xf32>
    %63 = arith.addf %61, %62 : vector<2x8x8xf32>
    %cst_22 = arith.constant dense<0xFF800000> : vector<2x8xf32>
    %64 = vector.multi_reduction <maximumf>, %63, %cst_22 [2] : vector<2x8x8xf32> to vector<2x8xf32>
    %65 = vector.shape_cast %64 : vector<2x8xf32> to vector<2x8x1xf32>
    %66 = vector.broadcast %65 : vector<2x8x1xf32> to vector<2x8x8xf32>
    %67 = arith.subf %63, %66 : vector<2x8x8xf32>
    %68 = math.exp %67 : vector<2x8x8xf32>
    %cst_23 = arith.constant dense<0.000000e+00> : vector<2x8xf32>
    %69 = vector.multi_reduction <add>, %68, %cst_23 [2] : vector<2x8x8xf32> to vector<2x8xf32>
    %70 = vector.shape_cast %69 : vector<2x8xf32> to vector<2x8x1xf32>
    %71 = tpu.reciprocal %70 {approx = true} : vector<2x8x1xf32> -> vector<2x8x1xf32>
    %72 = vector.broadcast %71 : vector<2x8x1xf32> to vector<2x8x8xf32>
    %73 = arith.mulf %68, %72 : vector<2x8x8xf32>
    %74 = arith.truncf %73 : vector<2x8x8xf32> to vector<2x8x8xbf16>
    "tpu.trace_start"() <{level = 10 : i32, message = "bqk,bkd->bqd"}> : () -> ()
    %cst_24 = arith.constant dense<0.000000e+00> : vector<2x8x16xf32>
    %75 = tpu.matmul %74, %60, %cst_24 {dimension_numbers = #tpu.dot_dimension_numbers<[2], [1], [1], [2], [0, 0, 0, 1, 1, 2], [0], [0]>} : vector<2x8x8xbf16>, vector<2x8x16xbf16>, vector<2x8x16xf32> -> vector<2x8x16xf32>
    "tpu.trace_stop"() : () -> ()
    %76 = vector.shape_cast %75 : vector<2x8x16xf32> to vector<16x16xf32>
    %77 = arith.truncf %76 : vector<16x16xf32> to vector<16x16xbf16>
    %c16 = arith.constant 16 : index
    %c0_25 = arith.constant 0 : index
    %78 = vector.load %arg5[%c16, %c0_25] : memref<32x32xbf16, #tpu.memory_space<vmem>>, vector<16x32xbf16>
    %cst_26 = arith.constant dense<0.000000e+00> : vector<16x32xf32>
    %79 = tpu.matmul %77, %78, %cst_26 {dimension_numbers = #tpu.dot_dimension_numbers<[1], [0], [0], [1], [0, 0, 1, 1], [], []>} : vector<16x16xbf16>, vector<16x32xbf16>, vector<16x32xf32> -> vector<16x32xf32>
    %80 = arith.addf %54, %79 : vector<16x32xf32>
    %81 = vector.broadcast %4 : vector<1x32xf32> to vector<16x32xf32>
    %82 = arith.addf %80, %81 : vector<16x32xf32>
    %83 = arith.addf %2, %82 : vector<16x32xf32>
    %cst_27 = arith.constant dense<0.000000e+00> : vector<16xf32>
    %84 = vector.multi_reduction <add>, %83, %cst_27 [1] : vector<16x32xf32> to vector<16xf32>
    %85 = vector.shape_cast %84 : vector<16xf32> to vector<16x1xf32>
    %cst_28 = arith.constant 3.200000e+01 : f32
    %86 = vector.broadcast %cst_28 : f32 to vector<16x1xf32>
    %87 = arith.divf %85, %86 : vector<16x1xf32>
    %88 = vector.broadcast %87 : vector<16x1xf32> to vector<16x32xf32>
    %89 = arith.subf %83, %88 : vector<16x32xf32>
    %90 = arith.mulf %89, %89 : vector<16x32xf32>
    %cst_29 = arith.constant dense<0.000000e+00> : vector<16xf32>
    %91 = vector.multi_reduction <add>, %90, %cst_29 [1] : vector<16x32xf32> to vector<16xf32>
    %92 = vector.shape_cast %91 : vector<16xf32> to vector<16x1xf32>
    %cst_30 = arith.constant 3.200000e+01 : f32
    %93 = vector.broadcast %cst_30 : f32 to vector<16x1xf32>
    %94 = arith.divf %92, %93 : vector<16x1xf32>
    %95 = vector.broadcast %87 : vector<16x1xf32> to vector<16x32xf32>
    %96 = arith.subf %83, %95 : vector<16x32xf32>
    %cst_31 = arith.constant 9.99999974E-6 : f32
    %97 = vector.broadcast %cst_31 : f32 to vector<16x1xf32>
    %98 = arith.addf %94, %97 : vector<16x1xf32>
    %99 = math.rsqrt %98 : vector<16x1xf32>
    %100 = vector.broadcast %99 : vector<16x1xf32> to vector<16x32xf32>
    %101 = arith.mulf %96, %100 : vector<16x32xf32>
    %102 = vector.broadcast %5 : vector<1x32xf32> to vector<16x32xf32>
    %103 = arith.mulf %101, %102 : vector<16x32xf32>
    %104 = vector.broadcast %6 : vector<1x32xf32> to vector<16x32xf32>
    %105 = arith.addf %103, %104 : vector<16x32xf32>
    %106 = arith.truncf %105 : vector<16x32xf32> to vector<16x32xbf16>
    %c0_32 = arith.constant 0 : index
    %c0_33 = arith.constant 0 : index
    %107 = vector.load %arg7[%c0_32, %c0_33] : memref<32x64xbf16, #tpu.memory_space<vmem>>, vector<32x64xbf16>
    %cst_34 = arith.constant dense<0.000000e+00> : vector<16x64xf32>
    %108 = tpu.matmul %106, %107, %cst_34 {dimension_numbers = #tpu.dot_dimension_numbers<[1], [0], [0], [1], [0, 0, 1, 1], [], []>} : vector<16x32xbf16>, vector<32x64xbf16>, vector<16x64xf32> -> vector<16x64xf32>
    %c0_35 = arith.constant 0 : index
    %c0_36 = arith.constant 0 : index
    %109 = vector.load %arg8[%c0_35, %c0_36] : memref<1x64xf32, #tpu.memory_space<vmem>>, vector<1x64xf32>
    %110 = vector.broadcast %109 : vector<1x64xf32> to vector<16x64xf32>
    %111 = arith.addf %108, %110 : vector<16x64xf32>
    %112 = arith.mulf %111, %111 : vector<16x64xf32>
    %113 = arith.mulf %111, %112 : vector<16x64xf32>
    %cst_37 = arith.constant 4.471500e-02 : f32
    %114 = vector.broadcast %cst_37 : f32 to vector<16x64xf32>
    %115 = arith.mulf %114, %113 : vector<16x64xf32>
    %116 = arith.addf %111, %115 : vector<16x64xf32>
    %cst_38 = arith.constant 0.797884583 : f32
    %117 = vector.broadcast %cst_38 : f32 to vector<16x64xf32>
    %118 = arith.mulf %117, %116 : vector<16x64xf32>
    %119 = math.tanh %118 : vector<16x64xf32>
    %cst_39 = arith.constant 1.000000e+00 : f32
    %120 = vector.broadcast %cst_39 : f32 to vector<16x64xf32>
    %121 = arith.addf %120, %119 : vector<16x64xf32>
    %cst_40 = arith.constant 5.000000e-01 : f32
    %122 = vector.broadcast %cst_40 : f32 to vector<16x64xf32>
    %123 = arith.mulf %122, %121 : vector<16x64xf32>
    %124 = arith.mulf %111, %123 : vector<16x64xf32>
    %125 = arith.truncf %124 : vector<16x64xf32> to vector<16x64xbf16>
    %c0_41 = arith.constant 0 : index
    %c0_42 = arith.constant 0 : index
    %126 = vector.load %arg9[%c0_41, %c0_42] : memref<64x32xbf16, #tpu.memory_space<vmem>>, vector<64x32xbf16>
    %cst_43 = arith.constant dense<0.000000e+00> : vector<16x32xf32>
    %127 = tpu.matmul %125, %126, %cst_43 {dimension_numbers = #tpu.dot_dimension_numbers<[1], [0], [0], [1], [0, 0, 1, 1], [], []>} : vector<16x64xbf16>, vector<64x32xbf16>, vector<16x32xf32> -> vector<16x32xf32>
    %128 = vector.broadcast %7 : vector<1x32xf32> to vector<16x32xf32>
    %129 = arith.addf %127, %128 : vector<16x32xf32>
    %130 = arith.addf %105, %129 : vector<16x32xf32>
    %cst_44 = arith.constant dense<0.000000e+00> : vector<16xf32>
    %131 = vector.multi_reduction <add>, %130, %cst_44 [1] : vector<16x32xf32> to vector<16xf32>
    %132 = vector.shape_cast %131 : vector<16xf32> to vector<16x1xf32>
    %cst_45 = arith.constant 3.200000e+01 : f32
    %133 = vector.broadcast %cst_45 : f32 to vector<16x1xf32>
    %134 = arith.divf %132, %133 : vector<16x1xf32>
    %135 = vector.broadcast %134 : vector<16x1xf32> to vector<16x32xf32>
    %136 = arith.subf %130, %135 : vector<16x32xf32>
    %137 = arith.mulf %136, %136 : vector<16x32xf32>
    %cst_46 = arith.constant dense<0.000000e+00> : vector<16xf32>
    %138 = vector.multi_reduction <add>, %137, %cst_46 [1] : vector<16x32xf32> to vector<16xf32>
    %139 = vector.shape_cast %138 : vector<16xf32> to vector<16x1xf32>
    %cst_47 = arith.constant 3.200000e+01 : f32
    %140 = vector.broadcast %cst_47 : f32 to vector<16x1xf32>
    %141 = arith.divf %139, %140 : vector<16x1xf32>
    %142 = vector.broadcast %134 : vector<16x1xf32> to vector<16x32xf32>
    %143 = arith.subf %130, %142 : vector<16x32xf32>
    %cst_48 = arith.constant 9.99999974E-6 : f32
    %144 = vector.broadcast %cst_48 : f32 to vector<16x1xf32>
    %145 = arith.addf %141, %144 : vector<16x1xf32>
    %146 = math.rsqrt %145 : vector<16x1xf32>
    %147 = vector.broadcast %146 : vector<16x1xf32> to vector<16x32xf32>
    %148 = arith.mulf %143, %147 : vector<16x32xf32>
    %149 = vector.broadcast %8 : vector<1x32xf32> to vector<16x32xf32>
    %150 = arith.mulf %148, %149 : vector<16x32xf32>
    %151 = vector.broadcast %9 : vector<1x32xf32> to vector<16x32xf32>
    %152 = arith.addf %150, %151 : vector<16x32xf32>
    %153 = vector.shape_cast %152 : vector<16x32xf32> to vector<2x8x32xf32>
    %154 = vector.broadcast %1 : vector<2x8x1xf32> to vector<2x8x32xf32>
    %155 = arith.mulf %153, %154 : vector<2x8x32xf32>
    %cst_49 = arith.constant dense<0.000000e+00> : vector<2x32xf32>
    %156 = vector.multi_reduction <add>, %155, %cst_49 [1] : vector<2x8x32xf32> to vector<2x32xf32>
    %cst_50 = arith.constant dense<0.000000e+00> : vector<2x1xf32>
    %157 = vector.multi_reduction <add>, %1, %cst_50 [1] : vector<2x8x1xf32> to vector<2x1xf32>
    %cst_51 = arith.constant 9.99999971E-10 : f32
    %158 = vector.broadcast %cst_51 : f32 to vector<2x1xf32>
    %159 = arith.maximumf %157, %158 : vector<2x1xf32>
    %160 = tpu.reciprocal %159 {approx = true} : vector<2x1xf32> -> vector<2x1xf32>
    %161 = vector.broadcast %160 : vector<2x1xf32> to vector<2x32xf32>
    %162 = arith.mulf %156, %161 : vector<2x32xf32>
    %163 = arith.truncf %162 : vector<2x32xf32> to vector<2x32xbf16>
    %c0_52 = arith.constant 0 : index
    %c0_53 = arith.constant 0 : index
    %164 = vector.load %arg10[%c0_52, %c0_53] : memref<32x128xbf16, #tpu.memory_space<vmem>>, vector<32x128xbf16>
    %cst_54 = arith.constant dense<0.000000e+00> : vector<2x128xf32>
    %165 = tpu.matmul %163, %164, %cst_54 {dimension_numbers = #tpu.dot_dimension_numbers<[1], [0], [0], [1], [0, 0, 1, 1], [], []>} : vector<2x32xbf16>, vector<32x128xbf16>, vector<2x128xf32> -> vector<2x128xf32>
    %c0_55 = arith.constant 0 : index
    %c0_56 = arith.constant 0 : index
    %166 = vector.load %arg11[%c0_55, %c0_56] : memref<1x128xf32, #tpu.memory_space<vmem>>, vector<1x128xf32>
    %167 = vector.broadcast %166 : vector<1x128xf32> to vector<2x128xf32>
    %168 = arith.addf %165, %167 : vector<2x128xf32>
    %169 = vector.shape_cast %168 : vector<2x128xf32> to vector<2x1x128xf32>
    %c0_57 = arith.constant 0 : index
    %c0_58 = arith.constant 0 : index
    %c0_59 = arith.constant 0 : index
    %170 = vector.load %arg12[%c0_57, %c0_58, %c0_59] : memref<2x1x128xf32, #tpu.memory_space<vmem>>, vector<2x1x128xf32>
    tpu.vector_store %arg12[%c0_57, %c0_58, %c0_59], %169 {strides = array<i32>} : memref<2x1x128xf32, #tpu.memory_space<vmem>>, vector<2x1x128xf32>,
    return
  }
  func.func @transform_0(%arg0: i32) -> (i32, i32, i32) {
    %c0_i32 = arith.constant 0 : i32
    %c0_i32_0 = arith.constant 0 : i32
    %c0_i32_1 = arith.constant 0 : i32
    return %arg0, %c0_i32, %c0_i32_0 : i32, i32, i32
  }
  func.func @transform_1(%arg0: i32) -> (i32, i32, i32) {
    %c0_i32 = arith.constant 0 : i32
    %c0_i32_0 = arith.constant 0 : i32
    %c0_i32_1 = arith.constant 0 : i32
    return %arg0, %c0_i32, %c0_i32_0 : i32, i32, i32
  }
  func.func @transform_2(%arg0: i32) -> (i32, i32) {
    %c0_i32 = arith.constant 0 : i32
    %c0_i32_0 = arith.constant 0 : i32
    %c0_i32_1 = arith.constant 0 : i32
    return %c0_i32, %c0_i32_0 : i32, i32
  }
  func.func @transform_3(%arg0: i32) -> (i32, i32) {
    %c0_i32 = arith.constant 0 : i32
    %c0_i32_0 = arith.constant 0 : i32
    %c0_i32_1 = arith.constant 0 : i32
    return %c0_i32, %c0_i32_0 : i32, i32
  }
  func.func @transform_4(%arg0: i32) -> (i32, i32) {
    %c0_i32 = arith.constant 0 : i32
    %c0_i32_0 = arith.constant 0 : i32
    %c0_i32_1 = arith.constant 0 : i32
    return %c0_i32, %c0_i32_0 : i32, i32
  }
  func.func @transform_5(%arg0: i32) -> (i32, i32) {
    %c0_i32 = arith.constant 0 : i32
    %c0_i32_0 = arith.constant 0 : i32
    %c0_i32_1 = arith.constant 0 : i32
    return %c0_i32, %c0_i32_0 : i32, i32
  }
  func.func @transform_6(%arg0: i32) -> (i32, i32) {
    %c0_i32 = arith.constant 0 : i32
    %c0_i32_0 = arith.constant 0 : i32
    %c0_i32_1 = arith.constant 0 : i32
    return %c0_i32, %c0_i32_0 : i32, i32
  }
  func.func @transform_7(%arg0: i32) -> (i32, i32) {
    %c0_i32 = arith.constant 0 : i32
    %c0_i32_0 = arith.constant 0 : i32
    %c0_i32_1 = arith.constant 0 : i32
    return %c0_i32, %c0_i32_0 : i32, i32
  }
  func.func @transform_8(%arg0: i32) -> (i32, i32) {
    %c0_i32 = arith.constant 0 : i32
    %c0_i32_0 = arith.constant 0 : i32
    %c0_i32_1 = arith.constant 0 : i32
    return %c0_i32, %c0_i32_0 : i32, i32
  }
  func.func @transform_9(%arg0: i32) -> (i32, i32) {
    %c0_i32 = arith.constant 0 : i32
    %c0_i32_0 = arith.constant 0 : i32
    %c0_i32_1 = arith.constant 0 : i32
    return %c0_i32, %c0_i32_0 : i32, i32
  }
  func.func @transform_10(%arg0: i32) -> (i32, i32) {
    %c0_i32 = arith.constant 0 : i32
    %c0_i32_0 = arith.constant 0 : i32
    %c0_i32_1 = arith.constant 0 : i32
    return %c0_i32, %c0_i32_0 : i32, i32
  }
  func.func @transform_11(%arg0: i32) -> (i32, i32, i32) {
    %c0_i32 = arith.constant 0 : i32
    %c0_i32_0 = arith.constant 0 : i32
    %c0_i32_1 = arith.constant 0 : i32
    return %arg0, %c0_i32, %c0_i32_0 : i32, i32, i32
  }
}

</mosaic_0001>

<bundles_post_ra>
// kernel: tpu_custom_call.1
= control target key start
LH: loop header
LB: loop body
LE: loop exit
PB: predicated region body
PF: predicated region fallthrough
CT: control target
= control target key end

     0   :  { %16 = vsyncpa [#allocation3], 0  ;;  %s1255_s0 = inlined_call_operand.vmem [shape: f32[2,8,32], index: 0, kind: input, shape index: {}]   ;;  %s1256_s1 = inlined_call_operand.vmem [shape: f32[2,8,1], index: 1, kind: input, shape index: {}]   ;;  %s1257_s2 = inlined_call_operand.vmem [shape: bf16[32,96], index: 2, kind: input, shape index: {}]   ;;  %s1258_s3 = inlined_call_operand.vmem [shape: f32[1,96], index: 3, kind: input, shape index: {}]   ;;  %s1259_s4 = inlined_call_operand.vmem [shape: bf16[32,32], index: 4, kind: input, shape index: {}]   ;;  %s1260_s5 = inlined_call_operand.vmem [shape: f32[6,32], index: 5, kind: input, shape index: {}]   ;;  %s1261_s6 = inlined_call_operand.hbm [shape: bf16[32,64], index: 6, kind: input, shape index: {}]   ;;  %s1262_s7 = inlined_call_operand.hbm [shape: f32[1,64], index: 7, kind: input, shape index: {}]   ;;  %s1263_s8 = inlined_call_operand.vmem [shape: bf16[64,32], index: 8, kind: input, shape index: {}]   ;;  %s1264_s9 = inlined_call_operand.hbm [shape: bf16[32,128], index: 9, kind: input, shape index: {}]   ;;  %s1265_s10 = inlined_call_operand.vmem [shape: f32[1,128], index: 10, kind: input, shape index: {}]   ;;  %s1266_s11 = inlined_call_operand.hbm [shape: f32[2,1,128], index: 11, kind: output, shape index: {}]  }
   0x1   :  { %17 = vsyncpa [#allocation6], 0  ;;  %s49_s19 = sshll.u32 %s1262_s7, 4  ;;  %s50_s19 = int_to_ptr.hbm [resolvable:$true] %s49_s19 }
   0x2   :  { %18 = vsyncpa [#allocation4], 0  ;;  %s1027_s20 = smov [#allocation5]   ;;  %s35_s24 = sshll.u32 %s1261_s6, 4  ;;  %s36_s24 = int_to_ptr.hbm [resolvable:$true] %s35_s24 }
   0x3   :  { %s51_s21 = sshll.u32 %s1027_s20, 4  ;;  %s1028_s25 = smov [#allocation2]   ;;  %s52_s21 = int_to_ptr.vmem [resolvable:$true] %s51_s21 }
   0x4   :  { %54 = dma.hbm_to_vmem [thread:$0]  %s50_s19, 16, %s52_s21, [#allocation6]  }
   0x5   :  { %s37_s26 = sshll.u32 %s1028_s25, 4  ;;  %s1029_s27 = smov 64   ;;  %s38_s26 = int_to_ptr.vmem [resolvable:$true] %s37_s26 }
   0x6   :  { %s1030_s28 = smov 4   ;;  %s61_s30 = sshll.u32 %s1264_s9, 4  ;;  %s62_s30 = int_to_ptr.hbm [resolvable:$true] %s61_s30 }
   0x7   :  { %43 = dma.hbm_to_vmem [thread:$0]  %s36_s24, 256, %s38_s26, [#allocation3], %s1029_s27, %s1029_s27, %s1030_s28  }
   0x8   :  { %s1031_s12 = smov [#allocation7]  }
   0x9   :  { %s63_s13 = sshll.u32 %s1031_s12, 4  ;;  %s64_s13 = int_to_ptr.vmem [resolvable:$true] %s63_s13 }
   0xa   :  { %69 = dma.hbm_to_vmem [thread:$0]  %s62_s30, 256, %s64_s13, [#allocation6], %s1029_s27, %s1029_s27, %s1030_s28  }
   0xb   :  { %1021 = dma.done.wait [#allocation3], 256  }
   0xc   :  { %1022 = vsyncadd [#allocation3], 4294967040 }
   0xd   :  { %1023 = dma.done.wait [#allocation6], 272  }
   0xe   :  { %1024 = vsyncadd [#allocation6], 4294967024  ;;  %v860_v0 = vld [vmem:[%s1257_s2 + $0x8] sm:$0xff]  ;;  %v859_v1 = vld [vmem:[%s1257_s2] sm:$0xff]  ;;  %vm111_vm0 = vcmask 261120   ;;  %s1033_s21 = smov 80   ;;  %v144_v33 = vlaneseq }
   0xf   :  { %v1123_v2 = vld [vmem:[%s1255_s0] sm:$0xff]  ;;  %121 = vmatpush.bf16.msra.mxu0 %v860_v0  ;;  %v1128_v3 = vld [vmem:[%s1255_s0 + $0x8] sm:$0xff]  ;;  %s1032_s0 = smov 112   ;;  %s1034_s22 = smov 96   ;;  %v1035_v16 = vmov 0   ;;  %vm161_vm1 = vcmask 130048  }
  0x10   :  { %v90_v4 = vpack.c.bf16 %v1128_v3, %v1123_v2  ;;  %v888_v5 = vld [vmem:[%s1258_s3] ss:$0 sm:$0xff]  ;;  %885 = vset.pattern.permute.xlu0 %v1035_v16  ;;  %886 = vset.pattern.permute.xlu1 %v1035_v16  ;;  %v1155_v20 = vld [vmem:[%s1256_s1 + $0x8] sm:$0xff]  ;;  %v145_v34 = vand.u32 127, %v144_v33  ;;  %vm217_vm2 = vcmask 64512   ;;  %vm247_vm3 = vcmask 1043456  }
  0x11   :  { %887 = vset.pattern.permute.xlu2 %v1035_v16  ;;  %v1149_v17 = vld [vmem:[%s1256_s1] sm:$0xff]  ;;  %v130_v21 = vsub.f32 1.0, %v1155_v20  ;;  %s1036_s1 = smov 48   ;;  %vm697_vm4 = vcmask 7168   ;;  %vm601_vm12 = vcmask 523264   ;;  %s1038_s17 = smov [#allocation8]  }
  0x12   :  { %v129_v18 = vsub.f32 1.0, %v1149_v17  ;;  %s781_s18 = sshll.u32 %s1038_s17, 4  ;;  %s783_s2 = sshll.u32 %s1266_s11, 4  ;;  %s782_s18 = int_to_ptr.vmem [resolvable:$true] %s781_s18  ;;  %s784_s2 = int_to_ptr.hbm [resolvable:$true] %s783_s2 }
  0x13   :  { %122 = vmatpush.bf16.msra.mxu0 %v859_v1  ;;  %v132_v22 = vmul.f32 -1e+09, %v130_v21 }
  0x14   :  { %v131_v19 = vmul.f32 -1e+09, %v129_v18 }
  0x16   :  { %805 = vmatmul.msk.bf16.vlgmr.msra.gmra.mxu0 %vm111_vm0, %v90_v4 }
  0x93   :  { %v124_v6 = vpop.f32.mrf.mxu0 }
  0x94   :  { %v125_v7 = vadd.f32 %v888_v5, %v124_v6 }
  0x96   :  { %v133_v8 = vpack.c.bf16 %v125_v7, %v125_v7 }
  0x98   :  { %v136_v9 = vunpack.c.l.b16 %v133_v8 }
  0x9a   :  { %v1136_v10 = vpack.c.b16 %v136_v9, %v136_v9 }
  0x9b   :  { %v126_v11 = vpop.f32.mrf.mxu0 }
  0x9c   :  { %v127_v12 = vadd.f32 %v888_v5, %v126_v11  ;;  %288 = vrot.lane.b32.xlu2 %v1136_v10, %s1032_s0  ;;  %290 = vrot.lane.b32.xlu1 %v1136_v10, %s1033_s21 }
  0x9d   :  { %138 = vrot.lane.b32.xlu0 %v1136_v10, %s1034_s22 }
  0x9e   :  { %v134_v13 = vpack.c.bf16 %v127_v12, %v127_v12 }
  0xa0   :  { %v182_v14 = vunpack.c.l.b16 %v134_v13 }
  0xa2   :  { %v1141_v15 = vpack.c.b16 %v182_v14, %v182_v14 }
  0xa4   :  { %311 = vrot.lane.b32.xlu2 %v1141_v15, %s1032_s0  ;;  %313 = vrot.lane.b32.xlu1 %v1141_v15, %s1033_s21  ;;  %s1039_s0 = smov 16   ;;  %s1040_s21 = smov 1  }
  0xa5   :  { %184 = vrot.lane.b32.xlu0 %v1141_v15, %s1034_s22 }
  0xac   :  { %188 = vperm.xlu1 %886, %v132_v22  }
  0xad   :  { %142 = vperm.xlu0 %885, %v131_v19  }
  0xf6   :  { %v289_v27 = vpop.permute.xlu2 %288 }
  0xfe   :  { %v312_v32 = vpop.permute.xlu2 %311 }
 0x10e   :  { %v291_v23 = vpop.permute.xlu1 %290 }
 0x10f   :  { %v139_v24 = vpop.permute.xlu0 %138  ;;  %v296_v25 = vsel %vm161_vm1, %v291_v23, 0 }
 0x110   :  { %v166_v26 = vsel %vm161_vm1, %v139_v24, 0  ;;  %305 = vmatpush.bf16.xpose.msrb.mxu0 %v296_v25 }
 0x111   :  { %175 = vmatpush.bf16.xpose.msra.mxu1 %v166_v26 }
 0x116   :  { %v314_v28 = vpop.permute.xlu1 %313 }
 0x117   :  { %v185_v29 = vpop.permute.xlu0 %184  ;;  %810 = vmatmul.msk.bf16.vlgmr.msrb.gmra.mxu0 %vm161_vm1, %v289_v27  ;;  %v319_v30 = vsel %vm161_vm1, %v314_v28, 0 }
 0x118   :  { %806 = vmatmul.msk.bf16.vlgmr.msra.gmra.mxu1 %vm161_vm1, %v133_v8  ;;  %v202_v31 = vsel %vm161_vm1, %v185_v29, 0 }
 0x119   :  { %211 = vmatpush.bf16.xpose.msra.mxu2 %v202_v31  ;;  %328 = vmatpush.bf16.xpose.msrb.mxu1 %v319_v30 }
 0x11e   :  { %v189_v45 = vpop.permute.xlu1 %188 }
 0x11f   :  { %v143_v35 = vpop.permute.xlu0 %142  ;;  %v190_v46 = vperm.slane %v189_v45, %v145_v34 }
 0x120   :  { %807 = vmatmul.msk.bf16.vlgmr.msra.gmra.mxu2 %vm161_vm1, %v134_v13  ;;  %v146_v36 = vperm.slane %v143_v35, %v145_v34 }
 0x128   :  { %811 = vmatmul.msk.bf16.vlgmr.msrb.gmra.mxu1 %vm161_vm1, %v312_v32 }
 0x194   :  { %v307_v37 = vpop.f32.mrf.mxu0 }
 0x195   :  { %v177_v38 = vpop.f32.mrf.mxu1  ;;  %v308_v39 = vadd.f32 %v307_v37, %v146_v36 }
 0x196   :  { %v178_v40 = vadd.f32 %v177_v38, %v146_v36 }
 0x197   :  { %v334_v41 = vsel %vm217_vm2, %v308_v39, -inf }
 0x198   :  { %335 = vmax.xlane.f32.xlu0 %v334_v41  ;;  %v218_v42 = vsel %vm217_vm2, %v178_v40, -inf }
 0x199   :  { %219 = vmax.xlane.f32.xlu2 %v218_v42 }
 0x19c   :  { %v309_v43 = vpop.f32.mrf.mxu0 }
 0x19d   :  { %v179_v44 = vpop.f32.mrf.mxu1 }
 0x1a3   :  { %v213_v47 = vpop.f32.mrf.mxu2 }
 0x1a4   :  { %v214_v48 = vadd.f32 %v213_v47, %v190_v46 }
 0x1a5   :  { %v330_v49 = vpop.f32.mrf.mxu1 }
 0x1a6   :  { %v331_v50 = vadd.f32 %v330_v49, %v190_v46  ;;  %v221_v51 = vsel %vm217_vm2, %v214_v48, -inf }
 0x1a7   :  { %222 = vmax.xlane.f32.xlu1 %v221_v51  ;;  %v1199_v51 = vld [vmem:[%s1260_s5] sm:$0x3f] }
 0x1a8   :  { %v337_v52 = vsel %vm217_vm2, %v331_v50, -inf }
 0x1a9   :  { %338 = vmax.xlane.f32.xlu2 %v337_v52 }
 0x1ab   :  { %v215_v53 = vpop.f32.mrf.mxu2 }
 0x1ac   :  { %264 = vrot.lane.b32.xlu0 %v1141_v15, %s1029_s27  ;;  %v449_v53 = vperm.slane %v1199_v51, 0 }
 0x1ad   :  { %v332_v54 = vpop.f32.mrf.mxu1 }
 0x1b4   :  { %379 = vrot.lane.b32.xlu0 %v1141_v15, %s1036_s1 }
 0x1c0   :  { %242 = vrot.lane.b32.xlu1 %v1136_v10, %s1029_s27 }
 0x1c8   :  { %358 = vrot.lane.b32.xlu1 %v1136_v10, %s1036_s1 }
 0x20b   :  { %v336_v60 = vpop.xlane.xlu0 %335 }
 0x20c   :  { %v220_v55 = vpop.xlane.xlu2 %219  ;;  %v340_v63 = vsub.f32 %v308_v39, %v336_v60  ;;  %v861_v39 = vld [vmem:[%s1259_s4] sm:$0xff] }
 0x20d   :  { %v224_v56 = vsub.f32 %v178_v40, %v220_v55  ;;  %442 = vmatpush.bf16.msra.mxu1 %v861_v39  ;;  %v862_v40 = vld [vmem:[%s1259_s4 + $0x8] sm:$0xff] }
 0x20e   :  { %v342_v1 = vmul.f32 1.442695, %v340_v63  ;;  %419 = vmatpush.bf16.msra.mxu0 %v862_v40 }
 0x20f   :  { %v226_v57 = vmul.f32 1.442695, %v224_v56 }
 0x211   :  { %891 = vpow2.f32 %v226_v57 }
 0x217   :  { %v892_v58 = vpop.eup %891 }
 0x218   :  { %v230_v59 = vsel %vm217_vm2, %v892_v58, 0.0 }
 0x219   :  { %231 = vadd.xlane.f32.xlu2 %v230_v59 }
 0x21a   :  { %v223_v61 = vpop.xlane.xlu1 %222 }
 0x21b   :  { %v225_v62 = vsub.f32 %v214_v48, %v223_v61 }
 0x21c   :  { %v339_v4 = vpop.xlane.xlu2 %338 }
 0x21d   :  { %v228_v0 = vmul.f32 1.442695, %v225_v62  ;;  %v341_v6 = vsub.f32 %v331_v50, %v339_v4 }
 0x21e   :  { %v265_v11 = vpop.permute.xlu0 %264 }
 0x21f   :  { %893 = vpow2.f32 %v228_v0  ;;  %v344_v8 = vmul.f32 1.442695, %v341_v6  ;;  %v270_v15 = vsel %vm247_vm3, %v265_v11, 0 }
 0x220   :  { %895 = vpow2.f32 %v342_v1  ;;  %v1037_v1 = vmov 32.0  }
 0x221   :  { %897 = vpow2.f32 %v344_v8  ;;  %v705_v8 = vsel %vm697_vm4, %v1155_v20, 0.0 }
 0x225   :  { %v894_v5 = vpop.eup %893 }
 0x226   :  { %v233_v7 = vsel %vm217_vm2, %v894_v5, 0.0  ;;  %v896_v9 = vpop.eup %895  ;;  %v380_v24 = vpop.permute.xlu0 %379 }
 0x227   :  { %234 = vadd.xlane.f32.xlu2 %v233_v7  ;;  %v346_v10 = vsel %vm217_vm2, %v896_v9, 0.0  ;;  %v898_v13 = vpop.eup %897  ;;  %v385_v26 = vsel %vm247_vm3, %v380_v24, 0 }
 0x228   :  { %v349_v16 = vsel %vm217_vm2, %v898_v13, 0.0 }
 0x22f   :  { %347 = vadd.xlane.f32.xlu2 %v346_v10 }
 0x232   :  { %v243_v12 = vpop.permute.xlu1 %242 }
 0x233   :  { %v249_v14 = vsel %vm247_vm3, %v243_v12, 0 }
 0x234   :  { %258 = vmatpush.bf16.msra.mxu3 %v249_v14 }
 0x237   :  { %350 = vadd.xlane.f32.xlu2 %v349_v16 }
 0x238   :  { %279 = vmatpush.bf16.msrb.mxu3 %v270_v15 }
 0x23a   :  { %v359_v18 = vpop.permute.xlu1 %358 }
 0x23b   :  { %v364_v19 = vsel %vm247_vm3, %v359_v18, 0 }
 0x23c   :  { %373 = vmatpush.bf16.msrb.mxu2 %v364_v19 }
 0x28c   :  { %v232_v21 = vpop.xlane.xlu2 %231 }
 0x28d   :  { %899 = vrcp.f32 %v232_v21 }
 0x293   :  { %v900_v22 = vpop.eup %899 }
 0x294   :  { %v238_v23 = vmul.f32 %v900_v22, %v892_v58 }
 0x296   :  { %v240_v25 = vpack.c.bf16 %v238_v23, %v238_v23 }
 0x298   :  { %808 = vmatmul.msk.bf16.vlgmr.msra.gmra.mxu3 %vm217_vm2, %v240_v25 }
 0x299   :  { %394 = vmatpush.bf16.msra.mxu3 %v385_v26 }
 0x29a   :  { %v235_v27 = vpop.xlane.xlu2 %234 }
 0x29b   :  { %901 = vrcp.f32 %v235_v27 }
 0x2a1   :  { %v902_v28 = vpop.eup %901 }
 0x2a2   :  { %v239_v29 = vmul.f32 %v902_v28, %v894_v5  ;;  %v348_v30 = vpop.xlane.xlu2 %347 }
 0x2a3   :  { %903 = vrcp.f32 %v348_v30 }
 0x2a4   :  { %v241_v31 = vpack.c.bf16 %v239_v29, %v239_v29  ;;  %v864_v29 = vld [vmem:[#allocation2 + $0x8] sm:$0xff] }
 0x2a5   :  { %541 = vmatpush.bf16.msra.mxu2 %v864_v29 }
 0x2a8   :  { %809 = vmatmul.msk.bf16.vlgmr.msrb.gmra.mxu3 %vm217_vm2, %v241_v31 }
 0x2a9   :  { %v904_v32 = vpop.eup %903 }
 0x2aa   :  { %v354_v33 = vmul.f32 %v904_v32, %v896_v9  ;;  %v351_v34 = vpop.xlane.xlu2 %350 }
 0x2ab   :  { %905 = vrcp.f32 %v351_v34 }
 0x2ac   :  { %v356_v35 = vpack.c.bf16 %v354_v33, %v354_v33  ;;  %907 = vrcp.f32 %v1037_v1  ;;  %v863_v33 = vld [vmem:[#allocation2] sm:$0xff] }
 0x2ad   :  { %542 = vmatpush.bf16.msra.mxu2 %v863_v33  ;;  %v865_v1 = vld [vmem:[%s1263_s8] sm:$0xff] }
 0x2ae   :  { %812 = vmatmul.msk.bf16.vlgmr.msrb.gmra.mxu2 %vm217_vm2, %v356_v35 }
 0x2b1   :  { %v906_v36 = vpop.eup %905 }
 0x2b2   :  { %v355_v37 = vmul.f32 %v906_v36, %v898_v13  ;;  %v908_v4 = vpop.eup %907 }
 0x2b3   :  { %v461_v5 = vmul.f32 32.0, %v908_v4  ;;  %vm465_vm5 = vweird.f32 %v908_v4 }
 0x2b4   :  { %v357_v38 = vpack.c.bf16 %v355_v37, %v355_v37 }
 0x2b5   :  { %v462_v6 = vsub.f32 1.0, %v461_v5 }
 0x2b8   :  { %813 = vmatmul.msk.bf16.vlgmr.msra.gmra.mxu3 %vm217_vm2, %v357_v38 }
 0x31b   :  { %v260_v41 = vpop.f32.mrf.mxu3 }
 0x323   :  { %v262_v42 = vpop.f32.mrf.mxu3 }
 0x32b   :  { %v281_v43 = vpop.f32.mrf.mxu3 }
 0x32c   :  { %v285_v44 = vpack.c.bf16 %v281_v43, %v260_v41 }
 0x32e   :  { %823 = vmatmul.msk.bf16.vlgmr.msra.gmra.mxu1 %vm161_vm1, %v285_v44 }
 0x331   :  { %v375_v45 = vpop.f32.mrf.mxu2 }
 0x333   :  { %v283_v46 = vpop.f32.mrf.mxu3 }
 0x339   :  { %v377_v47 = vpop.f32.mrf.mxu2 }
 0x33b   :  { %v396_v48 = vpop.f32.mrf.mxu3 }
 0x33c   :  { %v400_v49 = vpack.c.bf16 %v396_v48, %v375_v45  ;;  %v505_v48 = vperm.slane %v1199_v51, 1 }
 0x33e   :  { %818 = vmatmul.msk.bf16.vlgmr.msra.gmra.mxu0 %vm161_vm1, %v400_v49 }
 0x343   :  { %v398_v50 = vpop.f32.mrf.mxu3 }
 0x3ab   :  { %v444_v52 = vpop.f32.mrf.mxu1 }
 0x3b3   :  { %v446_v59 = vpop.f32.mrf.mxu1 }
 0x3bb   :  { %v421_v54 = vpop.f32.mrf.mxu0 }
 0x3bc   :  { %v445_v55 = vadd.f32 %v444_v52, %v421_v54 }
 0x3be   :  { %v450_v56 = vadd.f32 %v449_v53, %v445_v55 }
 0x3c0   :  { %v452_v57 = vadd.f32 %v450_v56, %v1123_v2  ;;  %v463_v2 = vmul.f32 %v908_v4, %v462_v6 }
 0x3c2   :  { %v454_v58 = vsel %vm111_vm0, %v452_v57, 0.0  ;;  %v464_v7 = vadd.f32 %v908_v4, %v463_v2 }
 0x3c3   :  { %455 = vadd.xlane.f32.xlu2 %v454_v58  ;;  %v423_v60 = vpop.f32.mrf.mxu0 }
 0x3c4   :  { %v447_v61 = vadd.f32 %v446_v59, %v423_v60  ;;  %v1209_v9 = vsel %vm465_vm5, %v908_v4, %v464_v7  ;;  %v868_v60 = vld [vmem:[%s1263_s8 + $0x18] sm:$0xff] }
 0x3c5   :  { %609 = vmatpush.bf16.msrb.mxu3 %v868_v60 }
 0x3c6   :  { %v451_v62 = vadd.f32 %v449_v53, %v447_v61  ;;  %v508_v53 = vperm.slane %v1199_v51, 2  ;;  %v867_v61 = vld [vmem:[%s1263_s8 + $0x10] sm:$0xff] }
 0x3c8   :  { %v453_v63 = vadd.f32 %v451_v62, %v1128_v3  ;;  %v706_v3 = vrot.slane %v705_v8, 4  ;;  %v866_v62 = vld [vmem:[%s1263_s8 + $0x8] sm:$0xff] }
 0x3c9   :  { %610 = vmatpush.bf16.msrb.mxu3 %v867_v61 }
 0x3ca   :  { %v457_v0 = vsel %vm111_vm0, %v453_v63, 0.0  ;;  %v707_v12 = vadd.f32 %v706_v3, %v705_v8 }
 0x3cb   :  { %458 = vadd.xlane.f32.xlu1 %v457_v0 }
 0x3cc   :  { %v708_v15 = vrot.slane %v707_v12, 2 }
 0x3cd   :  { %611 = vmatpush.bf16.msrb.mxu3 %v866_v62 }
 0x3ce   :  { %v709_v21 = vadd.f32 %v708_v15, %v707_v12 }
 0x3d0   :  { %v710_v24 = vrot.slane %v709_v21, 1 }
 0x3d1   :  { %612 = vmatpush.bf16.msrb.mxu3 %v865_v1 }
 0x3d2   :  { %v711_v26 = vadd.f32 %v710_v24, %v709_v21 }
 0x3d4   :  { %v713_v27 = vmax.f32 %v711_v26, 1e-09 }
 0x3d6   :  { %909 = vrcp.f32 %v713_v27  ;;  %v576_v27 = vperm.slane %v1199_v51, 3 }
 0x3dc   :  { %v910_v28 = vpop.eup %909 }
 0x3e4   :  { %673 = vperm.xlu1 %886, %v1149_v17  }
 0x436   :  { %v456_v10 = vpop.xlane.xlu2 %455 }
 0x437   :  { %v467_v11 = vmul.f32 %v1209_v9, %v456_v10 }
 0x439   :  { %v469_v13 = vsub.f32 %v452_v57, %v467_v11 }
 0x43b   :  { %v471_v14 = vmul.f32 %v469_v13, %v469_v13 }
 0x43d   :  { %v473_v16 = vsel %vm111_vm0, %v471_v14, 0.0 }
 0x43e   :  { %474 = vadd.xlane.f32.xlu0 %v473_v16  ;;  %v459_v18 = vpop.xlane.xlu1 %458 }
 0x43f   :  { %v468_v19 = vmul.f32 %v1209_v9, %v459_v18 }
 0x441   :  { %v470_v22 = vsub.f32 %v453_v63, %v468_v19  ;;  %v889_v63 = vld [vmem:[#allocation5] ss:$0 sm:$0xff] }
 0x443   :  { %v472_v23 = vmul.f32 %v470_v22, %v470_v22 }
 0x445   :  { %v476_v25 = vsel %vm111_vm0, %v472_v23, 0.0 }
 0x446   :  { %477 = vadd.xlane.f32.xlu2 %v476_v25 }
 0x452   :  { %678 = vperm.xlu0 %885, %v1155_v20  }
 0x45a   :  { %723 = vperm.xlu0 %885, %v910_v28  }
 0x4b1   :  { %v475_v30 = vpop.xlane.xlu0 %474 }
 0x4b2   :  { %v479_v31 = vmul.f32 %v475_v30, %v1209_v9 }
 0x4b4   :  { %v481_v32 = vadd.f32 1e-05, %v479_v31 }
 0x4b6   :  { %911 = vrsqrt.f32 %v481_v32  ;;  %vm489_vm7 = vweird.f32 %v481_v32 }
 0x4b9   :  { %v478_v34 = vpop.xlane.xlu2 %477 }
 0x4ba   :  { %v480_v35 = vmul.f32 %v478_v34, %v1209_v9 }
 0x4bc   :  { %v912_v36 = vpop.eup %911  ;;  %v482_v37 = vadd.f32 1e-05, %v480_v35 }
 0x4bd   :  { %v484_v38 = vmul.f32 %v912_v36, %v481_v32  ;;  %vm490_vm6 = vweird.f32 %v912_v36 }
 0x4be   :  { %913 = vrsqrt.f32 %v482_v37  ;;  %vm491_vm8 = vmor %vm489_vm7, %vm490_vm6  ;;  %vm499_vm10 = vweird.f32 %v482_v37 }
 0x4bf   :  { %v485_v39 = vmul.f32 %v912_v36, %v484_v38 }
 0x4c1   :  { %v486_v20 = vmul.f32 0.5, %v485_v39 }
 0x4c3   :  { %v487_v40 = vsub.f32 1.5, %v486_v20 }
 0x4c4   :  { %v914_v41 = vpop.eup %913 }
 0x4c5   :  { %v488_v42 = vmul.f32 %v912_v36, %v487_v40  ;;  %v494_v43 = vmul.f32 %v914_v41, %v482_v37  ;;  %vm500_vm9 = vweird.f32 %v914_v41 }
 0x4c6   :  { %vm501_vm11 = vmor %vm499_vm10, %vm500_vm9 }
 0x4c7   :  { %v495_v44 = vmul.f32 %v914_v41, %v494_v43  ;;  %v492_v45 = vsel %vm491_vm8, %v912_v36, %v488_v42  ;;  %v698_v36 = vsel %vm697_vm4, %v1149_v17, 0.0  ;;  %vm147_vm4 = vcmask 1041409  }
 0x4c8   :  { %v503_v49 = vmul.f32 %v492_v45, %v469_v13  ;;  %v699_v39 = vrot.slane %v698_v36, 4 }
 0x4c9   :  { %v496_v46 = vmul.f32 0.5, %v495_v44 }
 0x4ca   :  { %v506_v54 = vmul.f32 %v505_v48, %v503_v49 }
 0x4cb   :  { %v497_v47 = vsub.f32 1.5, %v496_v46 }
 0x4cc   :  { %v509_v57 = vadd.f32 %v508_v53, %v506_v54 }
 0x4cd   :  { %v498_v50 = vmul.f32 %v914_v41, %v497_v47 }
 0x4cf   :  { %v502_v52 = vsel %vm501_vm11, %v914_v41, %v498_v50  ;;  %v700_v41 = vadd.f32 %v699_v39, %v698_v36 }
 0x4d0   :  { %v504_v55 = vmul.f32 %v502_v52, %v470_v22 }
 0x4d1   :  { %v701_v45 = vrot.slane %v700_v41, 2 }
 0x4d2   :  { %v507_v56 = vmul.f32 %v505_v48, %v504_v55 }
 0x4d3   :  { %v702_v48 = vadd.f32 %v701_v45, %v700_v41 }
 0x4d4   :  { %v510_v58 = vadd.f32 %v508_v53, %v507_v56 }
 0x4d5   :  { %v703_v17 = vrot.slane %v702_v48, 1 }
 0x4d6   :  { %v511_v59 = vpack.c.bf16 %v510_v58, %v509_v57 }
 0x4d7   :  { %v704_v50 = vadd.f32 %v703_v17, %v702_v48  ;;  %v890_v48 = vld [vmem:[%s1265_s10] ss:$0 sm:$0xff] }
 0x4d8   :  { %832 = vmatmul.msk.bf16.vlgmr.msra.gmra.mxu2 %vm111_vm0, %v511_v59 }
 0x4d9   :  { %v712_v52 = vmax.f32 %v704_v50, 1e-09 }
 0x55b   :  { %v544_v0 = vpop.f32.mrf.mxu2 }
 0x55c   :  { %v545_v4 = vadd.f32 %v889_v63, %v544_v0 }
 0x55e   :  { %v549_v5 = vmul.f32 %v545_v4, %v545_v4 }
 0x560   :  { %v551_v6 = vmul.f32 %v549_v5, %v545_v4 }
 0x562   :  { %v553_v2 = vmul.f32 0.044715, %v551_v6  ;;  %v665_v6 = vperm.slane %v1199_v51, 4 }
 0x563   :  { %v546_v7 = vpop.f32.mrf.mxu2 }
 0x564   :  { %v555_v8 = vadd.f32 %v553_v2, %v545_v4  ;;  %v547_v3 = vadd.f32 %v889_v63, %v546_v7  ;;  %v870_v2 = vld [vmem:[#allocation7 + $0x8] sm:$0xff] }
 0x565   :  { %765 = vmatpush.bf16.msrb.mxu0 %v870_v2 }
 0x566   :  { %v557_v10 = vmul.f32 0.7978846, %v555_v8  ;;  %v550_v11 = vmul.f32 %v547_v3, %v547_v3 }
 0x568   :  { %v552_v12 = vmul.f32 %v550_v11, %v547_v3  ;;  %915 = vtanh.f32 %v557_v10 }
 0x56a   :  { %v554_v13 = vmul.f32 0.044715, %v552_v12  ;;  %v869_v12 = vld [vmem:[#allocation7] sm:$0xff] }
 0x56b   :  { %766 = vmatpush.bf16.msrb.mxu0 %v869_v12 }
 0x56c   :  { %v556_v14 = vadd.f32 %v554_v13, %v547_v3 }
 0x56e   :  { %v558_v15 = vmul.f32 0.7978846, %v556_v14  ;;  %v916_v16 = vpop.eup %915 }
 0x56f   :  { %v561_v18 = vadd.f32 1.0, %v916_v16 }
 0x570   :  { %917 = vtanh.f32 %v558_v15  ;;  %v674_v15 = vpop.permute.xlu1 %673 }
 0x571   :  { %v563_v21 = vmul.f32 0.5, %v561_v18  ;;  %919 = vrcp.f32 %v712_v52 }
 0x573   :  { %v565_v24 = vmul.f32 %v563_v21, %v545_v4 }
 0x576   :  { %v918_v19 = vpop.eup %917 }
 0x577   :  { %v562_v22 = vadd.f32 1.0, %v918_v19  ;;  %v920_v53 = vpop.eup %919 }
 0x579   :  { %v564_v23 = vmul.f32 0.5, %v562_v22 }
 0x57b   :  { %v566_v25 = vmul.f32 %v564_v23, %v547_v3 }
 0x57d   :  { %v567_v26 = vpack.c.bf16 %v566_v25, %v565_v24 }
 0x57f   :  { %849 = vmatmul.msk.bf16.vlgmr.msrb.gmra.mxu3 %vm601_vm12, %v567_v26  ;;  %v679_v26 = vpop.permute.xlu0 %678 }
 0x602   :  { %v614_v28 = vpop.f32.mrf.mxu3 }
 0x603   :  { %v615_v29 = vadd.f32 %v614_v28, %v576_v27 }
 0x605   :  { %v619_v30 = vadd.f32 %v615_v29, %v509_v57 }
 0x607   :  { %v621_v31 = vsel %vm111_vm0, %v619_v30, 0.0 }
 0x608   :  { %622 = vadd.xlane.f32.xlu2 %v621_v31 }
 0x60a   :  { %v616_v32 = vpop.f32.mrf.mxu3 }
 0x60b   :  { %v617_v33 = vadd.f32 %v616_v32, %v576_v27 }
 0x60d   :  { %v620_v34 = vadd.f32 %v617_v33, %v510_v58 }
 0x60f   :  { %v624_v35 = vsel %vm111_vm0, %v620_v34, 0.0 }
 0x610   :  { %625 = vadd.xlane.f32.xlu2 %v624_v35 }
 0x67b   :  { %v623_v37 = vpop.xlane.xlu2 %622 }
 0x67c   :  { %v627_v38 = vmul.f32 %v623_v37, %v1209_v9 }
 0x67e   :  { %v629_v20 = vsub.f32 %v619_v30, %v627_v38 }
 0x680   :  { %v631_v40 = vmul.f32 %v629_v20, %v629_v20 }
 0x682   :  { %v633_v42 = vsel %vm111_vm0, %v631_v40, 0.0  ;;  %v724_v40 = vpop.permute.xlu0 %723 }
 0x683   :  { %634 = vadd.xlane.f32.xlu2 %v633_v42  ;;  %v626_v43 = vpop.xlane.xlu2 %625 }
 0x684   :  { %v628_v44 = vmul.f32 %v626_v43, %v1209_v9 }
 0x686   :  { %v630_v46 = vsub.f32 %v620_v34, %v628_v44 }
 0x688   :  { %v632_v47 = vmul.f32 %v630_v46, %v630_v46 }
 0x68a   :  { %v636_v49 = vsel %vm111_vm0, %v632_v47, 0.0 }
 0x68b   :  { %637 = vadd.xlane.f32.xlu2 %v636_v49 }
 0x6a3   :  { %718 = vperm.xlu2 %887, %v920_v53  }
 0x6f6   :  { %v635_v54 = vpop.xlane.xlu2 %634 }
 0x6f7   :  { %v639_v55 = vmul.f32 %v635_v54, %v1209_v9 }
 0x6f9   :  { %v641_v56 = vadd.f32 1e-05, %v639_v55 }
 0x6fb   :  { %921 = vrsqrt.f32 %v641_v56  ;;  %vm649_vm14 = vweird.f32 %v641_v56 }
 0x6fe   :  { %v638_v57 = vpop.xlane.xlu2 %637 }
 0x6ff   :  { %v640_v58 = vmul.f32 %v638_v57, %v1209_v9  ;;  %v668_v9 = vperm.slane %v1199_v51, 5 }
 0x701   :  { %v922_v59 = vpop.eup %921  ;;  %v642_v60 = vadd.f32 1e-05, %v640_v58 }
 0x702   :  { %v644_v61 = vmul.f32 %v922_v59, %v641_v56  ;;  %vm650_vm13 = vweird.f32 %v922_v59 }
 0x703   :  { %923 = vrsqrt.f32 %v642_v60  ;;  %vm651_vm15 = vmor %vm649_vm14, %vm650_vm13  ;;  %vm659_vm2 = vweird.f32 %v642_v60 }
 0x704   :  { %v645_v62 = vmul.f32 %v922_v59, %v644_v61 }
 0x706   :  { %v646_v63 = vmul.f32 0.5, %v645_v62  ;;  %v719_v36 = vpop.permute.xlu2 %718 }
 0x708   :  { %v647_v0 = vsub.f32 1.5, %v646_v63 }
 0x709   :  { %v924_v1 = vpop.eup %923 }
 0x70a   :  { %v648_v4 = vmul.f32 %v922_v59, %v647_v0  ;;  %v654_v5 = vmul.f32 %v924_v1, %v642_v60  ;;  %vm660_vm1 = vweird.f32 %v924_v1 }
 0x70b   :  { %vm661_vm3 = vmor %vm659_vm2, %vm660_vm1 }
 0x70c   :  { %v652_v7 = vsel %vm651_vm15, %v922_v59, %v648_v4  ;;  %v655_v8 = vmul.f32 %v924_v1, %v654_v5 }
 0x70d   :  { %v663_v3 = vmul.f32 %v652_v7, %v629_v20 }
 0x70e   :  { %v656_v10 = vmul.f32 0.5, %v655_v8 }
 0x70f   :  { %v666_v11 = vmul.f32 %v665_v6, %v663_v3 }
 0x710   :  { %v657_v13 = vsub.f32 1.5, %v656_v10 }
 0x711   :  { %v669_v14 = vadd.f32 %v668_v9, %v666_v11 }
 0x712   :  { %v658_v16 = vmul.f32 %v924_v1, %v657_v13 }
 0x713   :  { %v681_v18 = vmul.f32 %v674_v15, %v669_v14 }
 0x714   :  { %v662_v19 = vsel %vm661_vm3, %v924_v1, %v658_v16 }
 0x715   :  { %v664_v21 = vmul.f32 %v662_v19, %v630_v46  ;;  %v683_v22 = vsel %vm111_vm0, %v681_v18, 0.0 }
 0x716   :  { %v684_v23 = vrot.slane %v683_v22, 4 }
 0x717   :  { %v667_v24 = vmul.f32 %v665_v6, %v664_v21 }
 0x718   :  { %v685_v51 = vadd.f32 %v684_v23, %v683_v22 }
 0x719   :  { %v670_v25 = vadd.f32 %v668_v9, %v667_v24 }
 0x71a   :  { %v686_v27 = vrot.slane %v685_v51, 2 }
 0x71b   :  { %v682_v28 = vmul.f32 %v679_v26, %v670_v25 }
 0x71c   :  { %v687_v29 = vadd.f32 %v686_v27, %v685_v51 }
 0x71d   :  { %v690_v30 = vsel %vm111_vm0, %v682_v28, 0.0 }
 0x71e   :  { %v688_v31 = vrot.slane %v687_v29, 1  ;;  %v691_v32 = vrot.slane %v690_v30, 4 }
 0x720   :  { %v692_v33 = vadd.f32 %v691_v32, %v690_v30  ;;  %v689_v34 = vadd.f32 %v688_v31, %v687_v29 }
 0x722   :  { %v693_v35 = vrot.slane %v692_v33, 2  ;;  %v726_v39 = vmul.f32 %v719_v36, %v689_v34 }
 0x724   :  { %v694_v37 = vadd.f32 %v693_v35, %v692_v33  ;;  %v728_v42 = vpack.c.bf16 %v726_v39, %v726_v39 }
 0x726   :  { %v695_v38 = vrot.slane %v694_v37, 1  ;;  %v740_v45 = vunpack.c.l.b16 %v728_v42 }
 0x728   :  { %v696_v20 = vadd.f32 %v695_v38, %v694_v37 }
 0x72a   :  { %v727_v41 = vmul.f32 %v724_v40, %v696_v20 }
 0x72c   :  { %v729_v43 = vpack.c.bf16 %v727_v41, %v727_v41 }
 0x72e   :  { %v741_v44 = vunpack.c.l.b16 %v729_v43 }
 0x730   :  { %v742_v46 = vsel %vm147_vm4, %v741_v44, %v740_v45 }
 0x731   :  { %v743_v47 = vpack.c.b16 %v742_v46, %v742_v46 }
 0x733   :  { %858 = vmatmul.msk.bf16.vlgmr.msrb.gmra.mxu0 %vm111_vm0, %v743_v47 }
 0x7b0   :  { %v768_v49 = vpop.f32.mrf.mxu0 }
 0x7b1   :  { %v769_v17 = vadd.f32 %v890_v48, %v768_v49 }
 0x7b3   :  { %v773_v50 = vrot.slane %v769_v17, 1  ;;  %775 = vst [vmem:[#allocation8] sm:$0x1] %v769_v17 }
 0x7b5   :  { %776 = vst [vmem:[#allocation8 + $0x1] sm:$0x1] %v773_v50 }
 0x7b6   :  { %789 = dma.vmem_to_hbm [thread:$0]  %s782_s18, 32, %s784_s2, [#allocation4], %s1039_s0, %s1039_s0, %s1040_s21  }
 0x7b8   :  { %v770_v52 = vpop.f32.mrf.mxu0 }
 0x7b9   :  { %1025 = dma.done.wait [#allocation4], 32  }
 0x7ba   :  { %1026 = vsyncadd [#allocation4], 4294967264 }
 0x7bb   :  { %794 = vsyncpa [#allocation3], 1 }
 0x7bc   :  { %795 = vsyncpa [#allocation6], 1 }
 0x7bd   :  { %796 = vsyncpa [#allocation4], 1 }

</bundles_post_ra>
